<compile_context>
chip_gen: v6e
topology: v6e:2x2x1
jax: 0.10.0
libtpu: 0.0.40
codegen_flags: <defaults>
</compile_context>

<pallas_src>
import functools

import jax
import jax.numpy as jnp
from jax.experimental import pallas as pl
from jax.experimental.pallas import tpu as pltpu

EPS = 1e-5  # PyTorch nn.BatchNorm2d default


# ------------------------------ fused kernel -------------------------------- #

def _basic_block_kernel(x_ref, m_ref, w1_ref, t1_ref, w2_ref, t2_ref, o_ref, *, W):
    """One batch block.
    x_ref/o_ref: [C, N]  (N = Bblk*H*W, batch folded into lanes)
    m_ref:       [9, N]  f32 boundary masks (1.0 = valid tap), tap-major
    w*_ref:      [Cout, 9*Cin]  conv weights with BN scale folded, tap-major
    t*_ref:      [Cout, 1]      folded BN shift
    """
    x = x_ref[...]          # [Cin, N]
    mask = m_ref[...]       # [9, N]
    N = x.shape[1]

    # tap order k = (dh+1)*3 + (dw+1), matching the offline weight layout
    offsets = [dh * W + dw for dh in (-1, 0, 1) for dw in (-1, 0, 1)]

    def conv3x3(inp, w):
        # inp: [Cin, N]; w: [Cout, 9*Cin] -> [Cout, N]
        taps = []
        for k, off in enumerate(offsets):
            if off == 0:
                # center tap: mask is all-true, skip the select
                taps.append(inp)
            else:
                # shifted[:, j] = inp[:, (j + off) mod N]; any wrap lands only on
                # lanes whose mask is 0 (out-of-bounds / cross-sample taps).
                shifted = pltpu.roll(inp, (-off) % N, 1)
                taps.append(shifted * mask[k:k + 1, :])
        patches = jnp.concatenate(taps, axis=0)            # [9*Cin, N]
        return jnp.dot(w, patches, preferred_element_type=jnp.float32)

    # conv1 (BN1 scale folded into w1) -> +shift -> ReLU
    h1 = jnp.maximum(conv3x3(x, w1_ref[...]) + t1_ref[...], 0.0)
    # conv2 (BN2 scale folded into w2) -> +shift
    h2 = conv3x3(h1, w2_ref[...]) + t2_ref[...]
    # identity shortcut + ReLU
    o_ref[...] = jnp.maximum(h2 + x, 0.0)


# ------------------------------ wrappers ------------------------------------ #

def prepare_params(p):
    """One-time, outside-jit parameter preprocessing (free per forward).

    Folds BN (eval) into the conv: scale goes into the weight rows, shift stays
    as a [Cout, 1] bias.  Weights are reshaped tap-major to [Cout, 9*Cin] so a
    single stacked matmul consumes the concatenated [9*Cin, N] patch operand.
    """
    def fold(w, g, b, m, v):
        scale = g / jnp.sqrt(v + EPS)                      # [Cout]
        shift = b - m * scale                              # [Cout]
        co, ci, kh, kw = w.shape
        # [Cout, Cin, 3, 3] -> [Cout, 3, 3, Cin] -> [Cout, 9*Cin], col = k*Cin + cin
        w2d = w.transpose(0, 2, 3, 1).reshape(co, kh * kw * ci)
        return w2d * scale[:, None], shift.reshape(-1, 1)

    w1, t1 = fold(p["conv1_w"], p["bn1_g"], p["bn1_b"], p["bn1_m"], p["bn1_v"])
    w2, t2 = fold(p["conv2_w"], p["bn2_g"], p["bn2_b"], p["bn2_m"], p["bn2_v"])
    return {"w1": w1, "t1": t1, "w2": w2, "t2": t2}


def basic_block_forward(x, prep, *, block_batch=None):
    """x: [B, C, H, W] float32 (NCHW, like PyTorch)."""
    B, C, H, W = x.shape
    HW = H * W
    Cout = prep["w1"].shape[0]
    assert C == Cout, "projection shortcut not implemented (in_planes must equal planes)"

    # Batch blocking: at most 2 grid steps (one per v7x TensorCore); on
    # single-TC v5e/v6e this collapses to 1-2 fat steps (amortizes step cost).
    if block_batch is None:
        block_batch = B // 2 if (B >= 2 and B % 2 == 0) else B
    assert B % block_batch == 0
    nblk = B // block_batch
    N = block_batch * HW                                   # lanes per grid step

    # One-time relayout: fold batch into the lane axis -> [C, B*HW].
    x_cn = x.reshape(B, C, HW).transpose(1, 0, 2).reshape(C, B * HW)

    # Precomputed per-tap validity masks (shared by both convs, repeats per
    # sample).  Constant index_map -> no per-step iota/div/mod in the kernel.
    lane = jnp.arange(HW, dtype=jnp.int32)
    hh, ww = lane // W, lane % W
    mask_rows = []
    for dh in (-1, 0, 1):
        for dw in (-1, 0, 1):
            mask_rows.append(((hh + dh >= 0) & (hh + dh < H) &
                              (ww + dw >= 0) & (ww + dw < W)).astype(jnp.float32))
    mask_blk = jnp.tile(jnp.stack(mask_rows, axis=0), (1, block_batch))   # [9, N]

    out = pl.pallas_call(
        functools.partial(_basic_block_kernel, W=W),
        out_shape=jax.ShapeDtypeStruct((C, B * HW), jnp.float32),
        grid=(nblk,),
        in_specs=[
            pl.BlockSpec((C, N), lambda b: (0, b)),            # activations block
            pl.BlockSpec((9, N), lambda b: (0, 0)),            # boundary masks
            pl.BlockSpec((Cout, 9 * C), lambda b: (0, 0)),     # conv1 weights (BN1 folded)
            pl.BlockSpec((Cout, 1), lambda b: (0, 0)),         # bn1 shift
            pl.BlockSpec((Cout, 9 * Cout), lambda b: (0, 0)),  # conv2 weights (BN2 folded)
            pl.BlockSpec((Cout, 1), lambda b: (0, 0)),         # bn2 shift
        ],
        out_specs=pl.BlockSpec((Cout, N), lambda b: (0, b)),
        compiler_params=pltpu.CompilerParams(
            dimension_semantics=("parallel",)),
    )(x_cn, mask_blk, prep["w1"], prep["t1"], prep["w2"], prep["t2"])

    # Undo the one-time relayout.
    return out.reshape(C, B, HW).transpose(1, 0, 2).reshape(B, Cout, H, W)


# ------------------------------ reference ----------------------------------- #

def reference_forward(x, p):
    def conv(y, w):
        return jax.lax.conv_general_dilated(
            y, w, window_strides=(1, 1), padding=((1, 1), (1, 1)),
            dimension_numbers=("NCHW", "OIHW", "NCHW"),
            precision=jax.lax.Precision.HIGHEST)

    def bn(y, g, b, m, v):
        sc = (g / jnp.sqrt(v + EPS))[None, :, None, None]
        return y * sc + (b - m * (g / jnp.sqrt(v + EPS)))[None, :, None, None]

    out = jax.nn.relu(bn(conv(x, p["conv1_w"]),
                         p["bn1_g"], p["bn1_b"], p["bn1_m"], p["bn1_v"]))
    out = bn(conv(out, p["conv2_w"]),
             p["bn2_g"], p["bn2_b"], p["bn2_m"], p["bn2_v"])
    out = out + x  # identity shortcut (stride=1, in_planes == planes)
    return jax.nn.relu(out)


# -------------------------------- main --------------------------------------- #

if __name__ == "__main__":
    key = jax.random.PRNGKey(0)
    ks = jax.random.split(key, 12)
    f32 = jnp.float32

    # BasicBlock(in_planes=4, planes=4, stride=1, use_batchnorm=True)
    B, C, H, W = 2, 4, 16, 16
    x = jax.random.normal(ks[0], (B, C, H, W), f32)

    raw = {
        "conv1_w": 0.2 * jax.random.normal(ks[1], (C, C, 3, 3), f32),
        "conv2_w": 0.2 * jax.random.normal(ks[2], (C, C, 3, 3), f32),
        "bn1_g": 1.0 + 0.1 * jax.random.normal(ks[3], (C,), f32),
        "bn1_b": 0.1 * jax.random.normal(ks[4], (C,), f32),
        "bn1_m": 0.1 * jax.random.normal(ks[5], (C,), f32),
        "bn1_v": jnp.abs(1.0 + 0.1 * jax.random.normal(ks[6], (C,), f32)),
        "bn2_g": 1.0 + 0.1 * jax.random.normal(ks[7], (C,), f32),
        "bn2_b": 0.1 * jax.random.normal(ks[8], (C,), f32),
        "bn2_m": 0.1 * jax.random.normal(ks[9], (C,), f32),
        "bn2_v": jnp.abs(1.0 + 0.1 * jax.random.normal(ks[10], (C,), f32)),
    }

    prep = prepare_params(raw)  # one-time weight permute + BN fold (outside jit)

    fwd = jax.jit(basic_block_forward)
    out = jax.block_until_ready(fwd(x, prep))

    assert out.shape == (B, C, H, W), out.shape
    assert bool(jnp.all(jnp.isfinite(out)))
    assert bool(jnp.all(out >= 0.0))  # final ReLU

    ref = reference_forward(x, raw)
    max_err = float(jnp.max(jnp.abs(out - ref)))
    assert max_err < 1e-2, f"max abs error vs reference: {max_err}"

    print("KERNEL_OK")
</pallas_src>

<mosaic_0001>
module attributes {stable_mosaic.version = 11 : i64} {
  func.func @_basic_block_kernel(%arg0: i32, %arg1: memref<4x256xf32, #tpu.memory_space<vmem>>, %arg2: memref<9x256xf32, #tpu.memory_space<vmem>>, %arg3: memref<4x36xf32, #tpu.memory_space<vmem>>, %arg4: memref<4x1xf32, #tpu.memory_space<vmem>>, %arg5: memref<4x36xf32, #tpu.memory_space<vmem>>, %arg6: memref<4x1xf32, #tpu.memory_space<vmem>>, %arg7: memref<4x256xf32, #tpu.memory_space<vmem>>) attributes {dimension_semantics = [#tpu.dimension_semantics<parallel>], iteration_bounds = array<i64: 2>, scalar_prefetch = 0 : i64, scratch_operands = 0 : i64, tpu.core_type = #tpu.core_type<tc>, window_params = [{transform_indices = @transform_0, window_bounds = array<i64: 4, 256>}, {pipeline_mode = #tpu.pipeline_mode<synchronous>, transform_indices = @transform_1, window_bounds = array<i64: 9, 256>}, {pipeline_mode = #tpu.pipeline_mode<synchronous>, transform_indices = @transform_2, window_bounds = array<i64: 4, 36>}, {pipeline_mode = #tpu.pipeline_mode<synchronous>, transform_indices = @transform_3, window_bounds = array<i64: 4, 1>}, {pipeline_mode = #tpu.pipeline_mode<synchronous>, transform_indices = @transform_4, window_bounds = array<i64: 4, 36>}, {pipeline_mode = #tpu.pipeline_mode<synchronous>, transform_indices = @transform_5, window_bounds = array<i64: 4, 1>}, {transform_indices = @transform_6, window_bounds = array<i64: 4, 256>}]} {
    %c0 = arith.constant 0 : index
    %c0_0 = arith.constant 0 : index
    %0 = vector.load %arg1[%c0, %c0_0] : memref<4x256xf32, #tpu.memory_space<vmem>>, vector<4x256xf32>
    %c0_1 = arith.constant 0 : index
    %c0_2 = arith.constant 0 : index
    %1 = vector.load %arg2[%c0_1, %c0_2] : memref<9x256xf32, #tpu.memory_space<vmem>>, vector<9x256xf32>
    %c0_3 = arith.constant 0 : index
    %c0_4 = arith.constant 0 : index
    %2 = vector.load %arg3[%c0_3, %c0_4] : memref<4x36xf32, #tpu.memory_space<vmem>>, vector<4x36xf32>
    %c17_i32 = arith.constant 17 : i32
    %3 = tpu.dynamic_rotate %0 by %c17_i32 dim 1 : vector<4x256xf32>, i32 -> vector<4x256xf32>
    %4 = vector.extract_strided_slice %1 {offsets = [0, 0], sizes = [1, 256], strides = [1, 1]} : vector<9x256xf32> to vector<1x256xf32>
    %5 = vector.broadcast %4 : vector<1x256xf32> to vector<4x256xf32>
    %6 = arith.mulf %3, %5 : vector<4x256xf32>
    %c16_i32 = arith.constant 16 : i32
    %7 = tpu.dynamic_rotate %0 by %c16_i32 dim 1 : vector<4x256xf32>, i32 -> vector<4x256xf32>
    %8 = vector.extract_strided_slice %1 {offsets = [1, 0], sizes = [1, 256], strides = [1, 1]} : vector<9x256xf32> to vector<1x256xf32>
    %9 = vector.broadcast %8 : vector<1x256xf32> to vector<4x256xf32>
    %10 = arith.mulf %7, %9 : vector<4x256xf32>
    %c15_i32 = arith.constant 15 : i32
    %11 = tpu.dynamic_rotate %0 by %c15_i32 dim 1 : vector<4x256xf32>, i32 -> vector<4x256xf32>
    %12 = vector.extract_strided_slice %1 {offsets = [2, 0], sizes = [1, 256], strides = [1, 1]} : vector<9x256xf32> to vector<1x256xf32>
    %13 = vector.broadcast %12 : vector<1x256xf32> to vector<4x256xf32>
    %14 = arith.mulf %11, %13 : vector<4x256xf32>
    %c1_i32 = arith.constant 1 : i32
    %15 = tpu.dynamic_rotate %0 by %c1_i32 dim 1 : vector<4x256xf32>, i32 -> vector<4x256xf32>
    %16 = vector.extract_strided_slice %1 {offsets = [3, 0], sizes = [1, 256], strides = [1, 1]} : vector<9x256xf32> to vector<1x256xf32>
    %17 = vector.broadcast %16 : vector<1x256xf32> to vector<4x256xf32>
    %18 = arith.mulf %15, %17 : vector<4x256xf32>
    %c255_i32 = arith.constant 255 : i32
    %19 = tpu.dynamic_rotate %0 by %c255_i32 dim 1 : vector<4x256xf32>, i32 -> vector<4x256xf32>
    %20 = vector.extract_strided_slice %1 {offsets = [5, 0], sizes = [1, 256], strides = [1, 1]} : vector<9x256xf32> to vector<1x256xf32>
    %21 = vector.broadcast %20 : vector<1x256xf32> to vector<4x256xf32>
    %22 = arith.mulf %19, %21 : vector<4x256xf32>
    %c241_i32 = arith.constant 241 : i32
    %23 = tpu.dynamic_rotate %0 by %c241_i32 dim 1 : vector<4x256xf32>, i32 -> vector<4x256xf32>
    %24 = vector.extract_strided_slice %1 {offsets = [6, 0], sizes = [1, 256], strides = [1, 1]} : vector<9x256xf32> to vector<1x256xf32>
    %25 = vector.broadcast %24 : vector<1x256xf32> to vector<4x256xf32>
    %26 = arith.mulf %23, %25 : vector<4x256xf32>
    %c240_i32 = arith.constant 240 : i32
    %27 = tpu.dynamic_rotate %0 by %c240_i32 dim 1 : vector<4x256xf32>, i32 -> vector<4x256xf32>
    %28 = vector.extract_strided_slice %1 {offsets = [7, 0], sizes = [1, 256], strides = [1, 1]} : vector<9x256xf32> to vector<1x256xf32>
    %29 = vector.broadcast %28 : vector<1x256xf32> to vector<4x256xf32>
    %30 = arith.mulf %27, %29 : vector<4x256xf32>
    %c239_i32 = arith.constant 239 : i32
    %31 = tpu.dynamic_rotate %0 by %c239_i32 dim 1 : vector<4x256xf32>, i32 -> vector<4x256xf32>
    %32 = vector.extract_strided_slice %1 {offsets = [8, 0], sizes = [1, 256], strides = [1, 1]} : vector<9x256xf32> to vector<1x256xf32>
    %33 = vector.broadcast %32 : vector<1x256xf32> to vector<4x256xf32>
    %34 = arith.mulf %31, %33 : vector<4x256xf32>
    %35 = tpu.concatenate %6, %10, %14, %18, %0, %22, %26, %30, %34 in 0 : vector<4x256xf32>, vector<4x256xf32>, vector<4x256xf32>, vector<4x256xf32>, vector<4x256xf32>, vector<4x256xf32>, vector<4x256xf32>, vector<4x256xf32>, vector<4x256xf32> -> vector<36x256xf32>
    %cst = arith.constant dense<0.000000e+00> : vector<4x256xf32>
    %36 = tpu.matmul %2, %35, %cst {dimension_numbers = #tpu.dot_dimension_numbers<[1], [0], [0], [1], [0, 0, 1, 1], [], []>} : vector<4x36xf32>, vector<36x256xf32>, vector<4x256xf32> -> vector<4x256xf32>
    %c0_5 = arith.constant 0 : index
    %c0_6 = arith.constant 0 : index
    %37 = vector.load %arg4[%c0_5, %c0_6] : memref<4x1xf32, #tpu.memory_space<vmem>>, vector<4x1xf32>
    %38 = vector.broadcast %37 : vector<4x1xf32> to vector<4x256xf32>
    %39 = arith.addf %36, %38 : vector<4x256xf32>
    %cst_7 = arith.constant 0.000000e+00 : f32
    %40 = vector.broadcast %cst_7 : f32 to vector<4x256xf32>
    %41 = arith.maximumf %39, %40 : vector<4x256xf32>
    %c0_8 = arith.constant 0 : index
    %c0_9 = arith.constant 0 : index
    %42 = vector.load %arg5[%c0_8, %c0_9] : memref<4x36xf32, #tpu.memory_space<vmem>>, vector<4x36xf32>
    %c17_i32_10 = arith.constant 17 : i32
    %43 = tpu.dynamic_rotate %41 by %c17_i32_10 dim 1 : vector<4x256xf32>, i32 -> vector<4x256xf32>
    %44 = vector.extract_strided_slice %1 {offsets = [0, 0], sizes = [1, 256], strides = [1, 1]} : vector<9x256xf32> to vector<1x256xf32>
    %45 = vector.broadcast %44 : vector<1x256xf32> to vector<4x256xf32>
    %46 = arith.mulf %43, %45 : vector<4x256xf32>
    %c16_i32_11 = arith.constant 16 : i32
    %47 = tpu.dynamic_rotate %41 by %c16_i32_11 dim 1 : vector<4x256xf32>, i32 -> vector<4x256xf32>
    %48 = vector.extract_strided_slice %1 {offsets = [1, 0], sizes = [1, 256], strides = [1, 1]} : vector<9x256xf32> to vector<1x256xf32>
    %49 = vector.broadcast %48 : vector<1x256xf32> to vector<4x256xf32>
    %50 = arith.mulf %47, %49 : vector<4x256xf32>
    %c15_i32_12 = arith.constant 15 : i32
    %51 = tpu.dynamic_rotate %41 by %c15_i32_12 dim 1 : vector<4x256xf32>, i32 -> vector<4x256xf32>
    %52 = vector.extract_strided_slice %1 {offsets = [2, 0], sizes = [1, 256], strides = [1, 1]} : vector<9x256xf32> to vector<1x256xf32>
    %53 = vector.broadcast %52 : vector<1x256xf32> to vector<4x256xf32>
    %54 = arith.mulf %51, %53 : vector<4x256xf32>
    %c1_i32_13 = arith.constant 1 : i32
    %55 = tpu.dynamic_rotate %41 by %c1_i32_13 dim 1 : vector<4x256xf32>, i32 -> vector<4x256xf32>
    %56 = vector.extract_strided_slice %1 {offsets = [3, 0], sizes = [1, 256], strides = [1, 1]} : vector<9x256xf32> to vector<1x256xf32>
    %57 = vector.broadcast %56 : vector<1x256xf32> to vector<4x256xf32>
    %58 = arith.mulf %55, %57 : vector<4x256xf32>
    %c255_i32_14 = arith.constant 255 : i32
    %59 = tpu.dynamic_rotate %41 by %c255_i32_14 dim 1 : vector<4x256xf32>, i32 -> vector<4x256xf32>
    %60 = vector.extract_strided_slice %1 {offsets = [5, 0], sizes = [1, 256], strides = [1, 1]} : vector<9x256xf32> to vector<1x256xf32>
    %61 = vector.broadcast %60 : vector<1x256xf32> to vector<4x256xf32>
    %62 = arith.mulf %59, %61 : vector<4x256xf32>
    %c241_i32_15 = arith.constant 241 : i32
    %63 = tpu.dynamic_rotate %41 by %c241_i32_15 dim 1 : vector<4x256xf32>, i32 -> vector<4x256xf32>
    %64 = vector.extract_strided_slice %1 {offsets = [6, 0], sizes = [1, 256], strides = [1, 1]} : vector<9x256xf32> to vector<1x256xf32>
    %65 = vector.broadcast %64 : vector<1x256xf32> to vector<4x256xf32>
    %66 = arith.mulf %63, %65 : vector<4x256xf32>
    %c240_i32_16 = arith.constant 240 : i32
    %67 = tpu.dynamic_rotate %41 by %c240_i32_16 dim 1 : vector<4x256xf32>, i32 -> vector<4x256xf32>
    %68 = vector.extract_strided_slice %1 {offsets = [7, 0], sizes = [1, 256], strides = [1, 1]} : vector<9x256xf32> to vector<1x256xf32>
    %69 = vector.broadcast %68 : vector<1x256xf32> to vector<4x256xf32>
    %70 = arith.mulf %67, %69 : vector<4x256xf32>
    %c239_i32_17 = arith.constant 239 : i32
    %71 = tpu.dynamic_rotate %41 by %c239_i32_17 dim 1 : vector<4x256xf32>, i32 -> vector<4x256xf32>
    %72 = vector.extract_strided_slice %1 {offsets = [8, 0], sizes = [1, 256], strides = [1, 1]} : vector<9x256xf32> to vector<1x256xf32>
    %73 = vector.broadcast %72 : vector<1x256xf32> to vector<4x256xf32>
    %74 = arith.mulf %71, %73 : vector<4x256xf32>
    %75 = tpu.concatenate %46, %50, %54, %58, %41, %62, %66, %70, %74 in 0 : vector<4x256xf32>, vector<4x256xf32>, vector<4x256xf32>, vector<4x256xf32>, vector<4x256xf32>, vector<4x256xf32>, vector<4x256xf32>, vector<4x256xf32>, vector<4x256xf32> -> vector<36x256xf32>
    %cst_18 = arith.constant dense<0.000000e+00> : vector<4x256xf32>
    %76 = tpu.matmul %42, %75, %cst_18 {dimension_numbers = #tpu.dot_dimension_numbers<[1], [0], [0], [1], [0, 0, 1, 1], [], []>} : vector<4x36xf32>, vector<36x256xf32>, vector<4x256xf32> -> vector<4x256xf32>
    %c0_19 = arith.constant 0 : index
    %c0_20 = arith.constant 0 : index
    %77 = vector.load %arg6[%c0_19, %c0_20] : memref<4x1xf32, #tpu.memory_space<vmem>>, vector<4x1xf32>
    %78 = vector.broadcast %77 : vector<4x1xf32> to vector<4x256xf32>
    %79 = arith.addf %76, %78 : vector<4x256xf32>
    %80 = arith.addf %79, %0 : vector<4x256xf32>
    %cst_21 = arith.constant 0.000000e+00 : f32
    %81 = vector.broadcast %cst_21 : f32 to vector<4x256xf32>
    %82 = arith.maximumf %80, %81 : vector<4x256xf32>
    %c0_22 = arith.constant 0 : index
    %c0_23 = arith.constant 0 : index
    %83 = vector.load %arg7[%c0_22, %c0_23] : memref<4x256xf32, #tpu.memory_space<vmem>>, vector<4x256xf32>
    tpu.vector_store %arg7[%c0_22, %c0_23], %82 {strides = array<i32>} : memref<4x256xf32, #tpu.memory_space<vmem>>, vector<4x256xf32>,
    return
  }
  func.func @transform_0(%arg0: i32) -> (i32, i32) {
    %c0_i32 = arith.constant 0 : i32
    %c0_i32_0 = arith.constant 0 : i32
    return %c0_i32, %arg0 : i32, i32
  }
  func.func @transform_1(%arg0: i32) -> (i32, i32) {
    %c0_i32 = arith.constant 0 : i32
    %c0_i32_0 = arith.constant 0 : i32
    %c0_i32_1 = arith.constant 0 : i32
    return %c0_i32, %c0_i32_0 : i32, i32
  }
  func.func @transform_2(%arg0: i32) -> (i32, i32) {
    %c0_i32 = arith.constant 0 : i32
    %c0_i32_0 = arith.constant 0 : i32
    %c0_i32_1 = arith.constant 0 : i32
    return %c0_i32, %c0_i32_0 : i32, i32
  }
  func.func @transform_3(%arg0: i32) -> (i32, i32) {
    %c0_i32 = arith.constant 0 : i32
    %c0_i32_0 = arith.constant 0 : i32
    %c0_i32_1 = arith.constant 0 : i32
    return %c0_i32, %c0_i32_0 : i32, i32
  }
  func.func @transform_4(%arg0: i32) -> (i32, i32) {
    %c0_i32 = arith.constant 0 : i32
    %c0_i32_0 = arith.constant 0 : i32
    %c0_i32_1 = arith.constant 0 : i32
    return %c0_i32, %c0_i32_0 : i32, i32
  }
  func.func @transform_5(%arg0: i32) -> (i32, i32) {
    %c0_i32 = arith.constant 0 : i32
    %c0_i32_0 = arith.constant 0 : i32
    %c0_i32_1 = arith.constant 0 : i32
    return %c0_i32, %c0_i32_0 : i32, i32
  }
  func.func @transform_6(%arg0: i32) -> (i32, i32) {
    %c0_i32 = arith.constant 0 : i32
    %c0_i32_0 = arith.constant 0 : i32
    return %c0_i32, %arg0 : i32, i32
  }
}

</mosaic_0001>

<bundles_post_ra>
// kernel: basic_block_forward.1
= control target key start
LH: loop header
LB: loop body
LE: loop exit
PB: predicated region body
PF: predicated region fallthrough
CT: control target
= control target key end

     0   :  { %s864_s21 = smov 0   ;;  %s1168_s0 = inlined_call_operand.vmem [shape: f32[4,512], index: 0, kind: input, shape index: {}]   ;;  %s1169_s1 = inlined_call_operand.vmem [shape: f32[9,256], index: 1, kind: input, shape index: {}]   ;;  %s1170_s2 = inlined_call_operand.vmem [shape: f32[4,36], index: 2, kind: input, shape index: {}]   ;;  %s1171_s3 = inlined_call_operand.vmem [shape: f32[4,1], index: 3, kind: input, shape index: {}]   ;;  %s1172_s4 = inlined_call_operand.vmem [shape: f32[4,36], index: 4, kind: input, shape index: {}]   ;;  %s1173_s5 = inlined_call_operand.vmem [shape: f32[4,1], index: 5, kind: input, shape index: {}]   ;;  %s1174_s6 = inlined_call_operand.vmem [shape: f32[4,512], index: 6, kind: output, shape index: {}]  }
   0x1 LB: > { %s772_s22 = sadd.s32 4294967295, %s817_s21   ;;  %p776_p0 = scmp.ge.s32.totalorder %s817_s21, 1  ;;  %s817_s21 = sphi %s864_s21, %s16_s21  }
   0x2   : > { %p213_p1 = scmp.lt.s32.totalorder %s817_s21, 3 }
   0x4   : > { %p214_p2 = pnand %p776_p0, %p213_p1 }
   0x5   : > { %s777_s23 = sshll.u32 (!%p214_p2), %s772_s22, 1  ;;  %s819_s28 = smov (!%p214_p2), 111  }
   0x6   : > { %217 = sbr.rel (%p214_p2) target bundleno = 718 (0x2ce), region = 44  ;;  %p244_p3 = scmp.lt.s32.totalorder (!%p214_p2), %s777_s23, 3 }
   0x7   : > { %s820_s29 = smov (!%p214_p2), 112   ;;  %s821_s30 = smov (!%p214_p2), 127  }
   0x8   : > { %s822_s7 = smov (!%p214_p2), 113   ;;  %s823_s8 = smov (!%p214_p2), 1  }
   0x9   : > { %s824_s9 = smov (!%p214_p2), 16   ;;  %s827_s10 = smov (!%p214_p2), 15  }
   0xa   : > { %s828_s11 = smov (!%p214_p2), 17  }
   0xb   : > { %s1176_s23 = smov (!%p244_p3, %s777_s23), 3  ;;  %v825_v2 = vmov 0.0   ;;  %v826_v3 = vmov 0   ;;  %v435_v4 = vld [vmem:[%s1171_s3] sm:$0xf]  ;;  %v268_v5 = vlaneseq  ;;  %v930_v11 = vld [vmem:[%s1169_s1 + $0x8] sm:$0xff] }
   0xc   : > { %s778_s24 = sshll.u32 %s1176_s23, 2  ;;  %515 = vmatprep.mubr.f32.mxu0 %v825_v2  ;;  %700 = vmatprep.mubr.f32.mxu1 %v825_v2  ;;  %v936_v13 = vld [vmem:[%s1169_s1 + $0x10] ss:$0 sm:$0xff]  ;;  %v941_v14 = vld [vmem:[%s1169_s1 + $0x18] ss:$0 sm:$0xff]  ;;  %v946_v15 = vld [vmem:[%s1169_s1] sm:$0xff] }
   0xd   : > { %s247_s27 = scalar_lea.vmem %s1168_s0, %s778_s24  ;;  %809 = vset.pattern.permute.xlu0 %v826_v3  ;;  %v921_v6 = vshrl.u32 %v268_v5, 7  ;;  %v923_v7 = vand.u32 127, %v268_v5  ;;  %vm426_vm1 = vcmask 1043456   ;;  %vm441_vm9 = vcmask 293888  }
   0xe   : > { %v880_v0 = vld [vmem:[%s247_s27] sm:$0xff] }
   0xf   : > { %385 = vrot.lane.b32.xlu1 %v880_v0, %s819_s28  ;;  %368 = vrot.lane.b32.xlu0 %v880_v0, %s820_s29  ;;  %v888_v1 = vcombine.high %v880_v0, %v880_v0  ;;  %v343_v10 = vsub.s32 5, %v921_v6  ;;  %vm389_vm0 = vcmp.lt.s32.totalorder %v923_v7, 111  ;;  %v377_v12 = vsub.s32 7, %v921_v6 }
  0x10   : > { %vm338_vm2 = vcmp.lt.s32.totalorder %v923_v7, 127  ;;  %v360_v18 = vsub.s32 6, %v921_v6  ;;  %vm372_vm3 = vcmp.lt.s32.totalorder %v923_v7, 112  ;;  %vm355_vm4 = vcmp.lt.s32.totalorder %v923_v7, 113 }
  0x11   : > { %v955_v21 = vrot.slane %v930_v11, %v343_v10  ;;  %v961_v24 = vrot.slane %v946_v15, %v377_v12  ;;  %v964_v25 = vrot.slane %v930_v11, %v377_v12  ;;  %v967_v26 = vrot.slane %v946_v15, %v343_v10 }
  0x12   : > { %v972_v29 = vrot.slane %v946_v15, %v360_v18  ;;  %v987_v37 = vrot.slane %v930_v11, %v360_v18  ;;  %v326_v44 = vsub.s32 3, %v921_v6  ;;  %vm321_vm5 = vcmp.lt.s32.totalorder %v923_v7, 1 }
  0x13   : > { %334 = vrot.lane.b32.xlu0 %v880_v0, %s821_s30  ;;  %387 = vrot.lane.b32.xlu1 %v888_v1, %s819_s28  ;;  %v292_v56 = vsub.s32 1, %v921_v6  ;;  %v309_v60 = vsub.s32 2, %v921_v6  ;;  %vm287_vm6 = vcmp.lt.s32.totalorder %v923_v7, 16  ;;  %v275_v2 = vsub.s32 0, %v921_v6 }
  0x14   : > { %v1001_v54 = vrot.slane %v946_v15, %v326_v44  ;;  %v1004_v55 = vrot.slane %v930_v11, %v326_v44  ;;  %vm304_vm7 = vcmp.lt.s32.totalorder %v923_v7, 15  ;;  %vm270_vm8 = vcmp.lt.s32.totalorder %v923_v7, 17  ;;  %v260_v44 = vld [vmem:[%s1170_s2] sm:$0xf] }
  0x15   : > { %v1021_v5 = vrot.slane %v946_v15, %v292_v56  ;;  %v1031_v10 = vrot.slane %v930_v11, %v309_v60  ;;  %v1039_v18 = vrot.slane %v946_v15, %v275_v2 }
  0x17   : > { %336 = vrot.lane.b32.xlu1 %v888_v1, %s821_s30  ;;  %370 = vrot.lane.b32.xlu0 %v888_v1, %s820_s29 }
  0x1b   : > { %353 = vrot.lane.b32.xlu1 %v888_v1, %s822_s7  ;;  %351 = vrot.lane.b32.xlu0 %v880_v0, %s822_s7 }
  0x1f   : > { %319 = vrot.lane.b32.xlu1 %v888_v1, %s823_s8  ;;  %317 = vrot.lane.b32.xlu0 %v880_v0, %s823_s8 }
  0x23   : > { %285 = vrot.lane.b32.xlu1 %v888_v1, %s824_s9  ;;  %283 = vrot.lane.b32.xlu0 %v880_v0, %s824_s9 }
  0x27   : > { %302 = vrot.lane.b32.xlu1 %v888_v1, %s827_s10  ;;  %300 = vrot.lane.b32.xlu0 %v880_v0, %s827_s10 }
  0x2b   : > { %266 = vrot.lane.b32.xlu1 %v888_v1, %s828_s11  ;;  %264 = vrot.lane.b32.xlu0 %v880_v0, %s828_s11 }
  0x2f   : > { %438 = vperm.xlu0 %809, %v435_v4  }
  0x81   : > { %v386_v8 = vpop.permute.xlu1 %385  ;;  %v369_v9 = vpop.permute.xlu0 %368 }
  0x85   : > { %v335_v16 = vpop.permute.xlu0 %334  ;;  %v388_v17 = vpop.permute.xlu1 %387 }
  0x86   : > { %v390_v19 = vsel %vm389_vm0, %v386_v8, %v388_v17  ;;  %v391_v20 = vsel %vm389_vm0, %v388_v17, %v386_v8  ;;  %v1024_v8 = vrot.slane %v930_v11, %v292_v56 }
  0x87   : > { %v400_v22 = vmul.f32 %v936_v13, %v390_v19  ;;  %v401_v23 = vmul.f32 %v941_v14, %v391_v20  ;;  %v1042_v19 = vrot.slane %v930_v11, %v275_v2 }
  0x89   : > { %783 = vmatprep.subr.msk.mxu0 %vm426_vm1, %v401_v23  ;;  %v337_v27 = vpop.permute.xlu1 %336  ;;  %v371_v28 = vpop.permute.xlu0 %370 }
  0x8a   : > { %v339_v30 = vsel %vm338_vm2, %v335_v16, %v337_v27  ;;  %v340_v31 = vsel %vm338_vm2, %v337_v27, %v335_v16  ;;  %v373_v32 = vsel %vm372_vm3, %v369_v9, %v371_v28  ;;  %v374_v33 = vsel %vm372_vm3, %v371_v28, %v369_v9  ;;  %784 = vmatpush1.msk.msra.mxu0 %vm426_vm1, %v400_v22 }
  0x8b   : > { %v350_v34 = vmul.f32 %v955_v21, %v340_v31  ;;  %v383_v35 = vmul.f32 %v961_v24, %v373_v32  ;;  %v384_v36 = vmul.f32 %v964_v25, %v374_v33  ;;  %v349_v38 = vmul.f32 %v967_v26, %v339_v30 }
  0x8c   : > { %v1028_v9 = vrot.slane %v946_v15, %v309_v60 }
  0x8d   : > { %v354_v39 = vpop.permute.xlu1 %353  ;;  %v352_v40 = vpop.permute.xlu0 %351  ;;  %v417_v41 = vrot.slane %v350_v34, 4  ;;  %v422_v45 = vrot.slane %v383_v35, 4  ;;  %v423_v46 = vrot.slane %v384_v36, 4  ;;  %v416_v49 = vrot.slane %v349_v38, 4 }
  0x8e   : > { %v356_v42 = vsel %vm355_vm4, %v352_v40, %v354_v39  ;;  %v357_v43 = vsel %vm355_vm4, %v354_v39, %v352_v40 }
  0x8f   : > { %v366_v47 = vmul.f32 %v972_v29, %v356_v42  ;;  %v367_v48 = vmul.f32 %v987_v37, %v357_v43  ;;  %v432_v59 = vsel %vm426_vm1, %v888_v1, %v417_v41  ;;  %v431_v61 = vsel %vm426_vm1, %v880_v0, %v416_v49 }
  0x91   : > { %v320_v50 = vpop.permute.xlu1 %319  ;;  %v318_v51 = vpop.permute.xlu0 %317  ;;  %v434_v52 = vsel %vm426_vm1, %v367_v48, %v423_v46  ;;  %v433_v53 = vsel %vm426_vm1, %v366_v47, %v422_v45 }
  0x92   : > { %475 = vmatprep.subr.mxu0 %v434_v52  ;;  %v322_v57 = vsel %vm321_vm5, %v318_v51, %v320_v50  ;;  %v323_v58 = vsel %vm321_vm5, %v320_v50, %v318_v51  ;;  %v621_v52 = vld [vmem:[%s1173_s5] sm:$0xf] }
  0x93   : > { %476 = vmatpush1.msra.mxu0 %v433_v53  ;;  %v332_v3 = vmul.f32 %v1001_v54, %v323_v58  ;;  %v333_v4 = vmul.f32 %v1004_v55, %v322_v57 }
  0x94   : > { %477 = vmatprep.subr.mxu0 %v432_v59 }
  0x95   : > { %v286_v62 = vpop.permute.xlu1 %285  ;;  %478 = vmatpush1.msra.mxu0 %v431_v61  ;;  %v284_v63 = vpop.permute.xlu0 %283  ;;  %v410_v20 = vrot.slane %v332_v3, 4  ;;  %v411_v22 = vrot.slane %v333_v4, 4 }
  0x96   : > { %v288_v6 = vsel %vm287_vm6, %v284_v63, %v286_v62  ;;  %v289_v12 = vsel %vm287_vm6, %v286_v62, %v284_v63 }
  0x97   : > { %v298_v28 = vmul.f32 %v1021_v5, %v289_v12  ;;  %v299_v30 = vmul.f32 %v1024_v8, %v288_v6 }
  0x99   : > { %v303_v16 = vpop.permute.xlu1 %302  ;;  %v301_v17 = vpop.permute.xlu0 %300  ;;  %v404_v38 = vrot.slane %v298_v28, 4  ;;  %v405_v39 = vrot.slane %v299_v30, 4 }
  0x9a   : > { %v305_v23 = vsel %vm304_vm7, %v301_v17, %v303_v16  ;;  %v306_v27 = vsel %vm304_vm7, %v303_v16, %v301_v17 }
  0x9b   : > { %v315_v31 = vmul.f32 %v1028_v9, %v306_v27  ;;  %v316_v15 = vmul.f32 %v1031_v10, %v305_v23 }
  0x9d   : > { %v267_v32 = vpop.permute.xlu1 %266  ;;  %v265_v33 = vpop.permute.xlu0 %264  ;;  %v430_v11 = vsel %vm426_vm1, %v316_v15, %v411_v22  ;;  %v429_v34 = vsel %vm426_vm1, %v315_v31, %v410_v20 }
  0x9e   : > { %v271_v35 = vsel %vm270_vm8, %v265_v33, %v267_v32  ;;  %v272_v36 = vsel %vm270_vm8, %v267_v32, %v265_v33  ;;  %479 = vmatprep.subr.mxu0 %v430_v11 }
  0x9f   : > { %v281_v40 = vmul.f32 %v1039_v18, %v272_v36  ;;  %v282_v41 = vmul.f32 %v1042_v19, %v271_v35  ;;  %480 = vmatpush1.msra.mxu0 %v429_v34 }
  0xa1   : > { %v428_v42 = vsel %vm426_vm1, %v282_v41, %v405_v39  ;;  %v427_v43 = vsel %vm426_vm1, %v281_v40, %v404_v38 }
  0xa2   : > { %481 = vmatprep.subr.mxu0 %v428_v42 }
  0xa3   : > { %482 = vmatpush1.msra.mxu0 %v427_v43 }
  0xa4   : > { %785 = vmatmul.mubr.msk.f32.vlgmr.msra.gmra.mxu0 %vm441_vm9, %v260_v44 }
  0xaa   : > { %v439_v45 = vpop.permute.xlu0 %438 }
 0x164   : > { %v517_v46 = vpop.f32.mrf.mxu0 }
 0x165   : > { %v518_v47 = vadd.f32 %v517_v46, %v439_v45 }
 0x166   : > { %v519_v48 = vpop.f32.mrf.mxu0 }
 0x167   : > { %v1066_v49 = vmax.f32 %v518_v47, 0.0  ;;  %v520_v50 = vadd.f32 %v519_v48, %v439_v45 }
 0x169   : > { %581 = vrot.lane.b32.xlu0 %v1066_v49, %s819_s28  ;;  %573 = vrot.lane.b32.xlu1 %v1066_v49, %s820_s29  ;;  %v523_v51 = vmax.f32 %v520_v50, 0.0 }
 0x16d   : > { %557 = vrot.lane.b32.xlu0 %v1066_v49, %s821_s30  ;;  %575 = vrot.lane.b32.xlu1 %v523_v51, %s820_s29 }
 0x171   : > { %565 = vrot.lane.b32.xlu0 %v1066_v49, %s822_s7  ;;  %583 = vrot.lane.b32.xlu1 %v523_v51, %s819_s28 }
 0x175   : > { %549 = vrot.lane.b32.xlu0 %v1066_v49, %s823_s8  ;;  %559 = vrot.lane.b32.xlu1 %v523_v51, %s821_s30 }
 0x179   : > { %533 = vrot.lane.b32.xlu0 %v1066_v49, %s824_s9  ;;  %567 = vrot.lane.b32.xlu1 %v523_v51, %s822_s7 }
 0x17d   : > { %541 = vrot.lane.b32.xlu0 %v1066_v49, %s827_s10  ;;  %551 = vrot.lane.b32.xlu1 %v523_v51, %s823_s8 }
 0x181   : > { %525 = vrot.lane.b32.xlu0 %v1066_v49, %s828_s11  ;;  %535 = vrot.lane.b32.xlu1 %v523_v51, %s824_s9  ;;  %s253_s9 = scalar_lea.vmem %s1174_s6, %s778_s24 }
 0x185   : > { %624 = vperm.xlu0 %809, %v621_v52   ;;  %543 = vrot.lane.b32.xlu1 %v523_v51, %s827_s10 }
 0x189   : > { %527 = vrot.lane.b32.xlu1 %v523_v51, %s828_s11 }
 0x1db   : > { %v582_v53 = vpop.permute.xlu0 %581  ;;  %v574_v56 = vpop.permute.xlu1 %573 }
 0x1df   : > { %v558_v57 = vpop.permute.xlu0 %557  ;;  %v576_v58 = vpop.permute.xlu1 %575 }
 0x1e0   : > { %v577_v63 = vsel %vm372_vm3, %v574_v56, %v576_v58  ;;  %v578_v4 = vsel %vm372_vm3, %v576_v58, %v574_v56 }
 0x1e1   : > { %v579_v12 = vmul.f32 %v577_v63, %v961_v24 }
 0x1e3   : > { %v566_v59 = vpop.permute.xlu0 %565  ;;  %v584_v60 = vpop.permute.xlu1 %583  ;;  %v609_v27 = vrot.slane %v579_v12, 4 }
 0x1e4   : > { %v585_v61 = vsel %vm389_vm0, %v582_v53, %v584_v60  ;;  %v586_v62 = vsel %vm389_vm0, %v584_v60, %v582_v53  ;;  %v524_v60 = vld [vmem:[%s1172_s4] sm:$0xf] }
 0x1e5   : > { %v587_v2 = vmul.f32 %v936_v13, %v585_v61  ;;  %v588_v3 = vmul.f32 %v941_v14, %v586_v62  ;;  %v580_v13 = vmul.f32 %v578_v4, %v964_v25 }
 0x1e7   : > { %786 = vmatprep.subr.msk.mxu1 %vm426_vm1, %v588_v3  ;;  %v560_v6 = vpop.permute.xlu1 %559  ;;  %v550_v20 = vpop.permute.xlu0 %549  ;;  %v610_v30 = vrot.slane %v580_v13, 4 }
 0x1e8   : > { %v561_v16 = vsel %vm338_vm2, %v558_v57, %v560_v6  ;;  %v562_v17 = vsel %vm338_vm2, %v560_v6, %v558_v57  ;;  %787 = vmatpush1.msk.msra.mxu1 %vm426_vm1, %v587_v2 }
 0x1e9   : > { %v564_v14 = vmul.f32 %v562_v17, %v955_v21  ;;  %v563_v22 = vmul.f32 %v561_v16, %v967_v26 }
 0x1eb   : > { %v568_v23 = vpop.permute.xlu1 %567  ;;  %v604_v31 = vrot.slane %v564_v14, 4  ;;  %v603_v25 = vrot.slane %v563_v22, 4  ;;  %v534_v33 = vpop.permute.xlu0 %533 }
 0x1ec   : > { %v569_v24 = vsel %vm355_vm4, %v566_v59, %v568_v23  ;;  %v570_v28 = vsel %vm355_vm4, %v568_v23, %v566_v59 }
 0x1ed   : > { %v571_v15 = vmul.f32 %v569_v24, %v972_v29  ;;  %v572_v32 = vmul.f32 %v570_v28, %v987_v37  ;;  %v618_v36 = vsel %vm426_vm1, %v523_v51, %v604_v31  ;;  %v617_v29 = vsel %vm426_vm1, %v1066_v49, %v603_v25 }
 0x1ef   : > { %v552_v11 = vpop.permute.xlu1 %551  ;;  %v620_v21 = vsel %vm426_vm1, %v572_v32, %v610_v30  ;;  %v619_v26 = vsel %vm426_vm1, %v571_v15, %v609_v27  ;;  %v542_v40 = vpop.permute.xlu0 %541 }
 0x1f0   : > { %660 = vmatprep.subr.mxu1 %v620_v21  ;;  %v553_v34 = vsel %vm321_vm5, %v550_v20, %v552_v11  ;;  %v554_v35 = vsel %vm321_vm5, %v552_v11, %v550_v20 }
 0x1f1   : > { %661 = vmatpush1.msra.mxu1 %v619_v26  ;;  %v555_v38 = vmul.f32 %v554_v35, %v1001_v54  ;;  %v556_v39 = vmul.f32 %v553_v34, %v1004_v55 }
 0x1f2   : > { %662 = vmatprep.subr.mxu1 %v618_v36 }
 0x1f3   : > { %663 = vmatpush1.msra.mxu1 %v617_v29  ;;  %v536_v37 = vpop.permute.xlu1 %535  ;;  %v597_v44 = vrot.slane %v555_v38, 4  ;;  %v598_v45 = vrot.slane %v556_v39, 4  ;;  %v526_v50 = vpop.permute.xlu0 %525 }
 0x1f4   : > { %v537_v41 = vsel %vm287_vm6, %v534_v33, %v536_v37  ;;  %v538_v42 = vsel %vm287_vm6, %v536_v37, %v534_v33 }
 0x1f5   : > { %v539_v54 = vmul.f32 %v538_v42, %v1021_v5  ;;  %v540_v55 = vmul.f32 %v537_v41, %v1024_v8 }
 0x1f7   : > { %v544_v43 = vpop.permute.xlu1 %543  ;;  %v591_v5 = vrot.slane %v539_v54, 4  ;;  %v592_v58 = vrot.slane %v540_v55, 4 }
 0x1f8   : > { %v545_v46 = vsel %vm304_vm7, %v542_v40, %v544_v43  ;;  %v546_v47 = vsel %vm304_vm7, %v544_v43, %v542_v40 }
 0x1f9   : > { %v547_v48 = vmul.f32 %v546_v47, %v1028_v9  ;;  %v548_v49 = vmul.f32 %v545_v46, %v1031_v10 }
 0x1fb   : > { %v528_v51 = vpop.permute.xlu1 %527  ;;  %v616_v52 = vsel %vm426_vm1, %v548_v49, %v598_v45  ;;  %v615_v53 = vsel %vm426_vm1, %v547_v48, %v597_v44 }
 0x1fc   : > { %v529_v56 = vsel %vm270_vm8, %v526_v50, %v528_v51  ;;  %v530_v57 = vsel %vm270_vm8, %v528_v51, %v526_v50  ;;  %664 = vmatprep.subr.mxu1 %v616_v52 }
 0x1fd   : > { %v531_v8 = vmul.f32 %v530_v57, %v1039_v18  ;;  %v532_v9 = vmul.f32 %v529_v56, %v1042_v19  ;;  %665 = vmatpush1.msra.mxu1 %v615_v53 }
 0x1ff   : > { %v614_v10 = vsel %vm426_vm1, %v532_v9, %v592_v58  ;;  %v613_v59 = vsel %vm426_vm1, %v531_v8, %v591_v5 }
 0x200   : > { %666 = vmatprep.subr.mxu1 %v614_v10  ;;  %v625_v7 = vpop.permute.xlu0 %624 }
 0x201   : > { %667 = vmatpush1.msra.mxu1 %v613_v59 }
 0x202   : > { %788 = vmatmul.mubr.msk.f32.vlgmr.msra.gmra.mxu1 %vm441_vm9, %v524_v60 }
 0x2c2   : > { %v702_v61 = vpop.f32.mrf.mxu1 }
 0x2c3   : > { %v703_v62 = vadd.f32 %v702_v61, %v625_v7 }
 0x2c4   : > { %v704_v18 = vpop.f32.mrf.mxu1 }
 0x2c5   : > { %v707_v19 = vadd.f32 %v703_v62, %v880_v0  ;;  %v705_v63 = vadd.f32 %v704_v18, %v625_v7 }
 0x2c7   : > { %v708_v2 = vadd.f32 %v705_v63, %v888_v1  ;;  %v709_v3 = vmax.f32 %v707_v19, 0.0 }
 0x2c9   : > { %v710_v4 = vmax.f32 %v708_v2, 0.0 }
 0x2cb   : > { %v713_v6 = vcombine.low %v709_v3, %v710_v4 }
 0x2cd   : > { %715 = vst [vmem:[%s253_s9] sm:$0xff] %v713_v6 }
 0x2ce PF: > { %s16_s21 = sadd.s32 1, %s817_s21  }
 0x2cf   : > { %p13_p4 = scmp.ge.s32.totalorder %s16_s21, 4  }
 0x2d1   :  { %15 = sbr.rel (!%p13_p4) target bundleno = 1 (0x1), region = 74 }

</bundles_post_ra>
